<compile_context>
chip_gen: v7x
topology: tpu7x:2x2x1
jax: 0.10.0
libtpu: 0.0.40
codegen_flags: <defaults>
</compile_context>

<pallas_src>
import jax
import jax.numpy as jnp
from jax.experimental import pallas as pl
from jax.experimental.pallas import tpu as pltpu

# Scoped-VMEM budget: fits v7x (64 MiB per TC physical) and leaves headroom on
# v5e/v6e (128 MiB); comfortably covers TB=8192 (~24 MiB of lane-padded,
# double-buffered inputs + a few MiB of in-kernel intermediates).
_VMEM_LIMIT_BYTES = 48 << 20

# Row offsets of each weight piece inside the packed (80, 10) weight operand.
# Every piece starts on an 8-row boundary so in-kernel static slices are
# sublane-aligned.
_W1A_R, _W1B_R, _W1CD_R, _B1_R = 0, 16, 32, 40
_W2_R, _B2_R, _W3_R, _B3_R = 48, 56, 64, 72
_PACK_ROWS = 80


def _pusher_kernel(c1_ref, c2_ref, ss_ref, w_ref, o_ref):
    f32 = jnp.float32
    # Inputs arrive in their native dtype; upcast in-kernel (free on the VPU).
    c1 = c1_ref[...].astype(f32)                     # [TB, 13]
    c2 = c2_ref[...].astype(f32)                     # [TB, 13]
    ss = ss_ref[...].astype(f32)                     # [TB, 4]  (suited | stacksize)

    # ---- FC1 (batch-major), split row-wise over the separate input streams ----
    h1 = jnp.dot(c1, w_ref[_W1A_R:_W1A_R + 13, :], preferred_element_type=f32)
    h1 = h1 + jnp.dot(c2, w_ref[_W1B_R:_W1B_R + 13, :], preferred_element_type=f32)
    h1 = h1 + jnp.dot(ss, w_ref[_W1CD_R:_W1CD_R + 4, :], preferred_element_type=f32)
    h1 = jnp.maximum(h1 + w_ref[_B1_R:_B1_R + 1, :], 0.0)        # [TB, 10]

    # ---- feature-major tail: batch lives on the 128-lane axis ----
    h1t = h1.T                                                    # [10, TB]
    h2t = jnp.dot(w_ref[_W2_R:_W2_R + 5, :], h1t, preferred_element_type=f32)
    h2t = jnp.maximum(h2t + w_ref[_B2_R:_B2_R + 5, 0:1], 0.0)     # [5, TB]
    zt = jnp.dot(w_ref[_W3_R:_W3_R + 1, 0:5], h2t, preferred_element_type=f32)
    zt = zt + w_ref[_B3_R:_B3_R + 1, 0:1]                         # [1, TB]

    # Numerically-stable, exact sigmoid: clamp so exp never overflows,
    # exact reciprocal (negligible cost: only TB elements per tile).
    zt = jnp.clip(zt, -30.0, 30.0)
    o_ref[...] = pl.reciprocal(1.0 + jnp.exp(-zt), approx=False)  # lane-dense (1,TB)


def pusher_forward(card1, card2, suited, stacksize, params, *, max_tile=8192):
    """Forward pass equivalent to the PyTorch Pusher module.

    params = (w1 [10,30], b1 [10], w2 [5,10], b2 [5], w3 [1,5], b3 [1])
    (PyTorch nn.Linear layout: weight[out, in], bias[out]).
    """
    w1, b1, w2, b2, w3, b3 = params
    f32 = jnp.float32

    # Merge the two narrow streams (suited [B,1] + stacksize [B,3]) into one
    # [B,4] stream: one fewer lane-padded VMEM buffer pair and one fewer DMA
    # per grid step.  (If the producer can emit them adjacent — or emit a
    # feature-major lane-dense x^T slab — do it upstream instead.)
    ss = jnp.concatenate([suited, stacksize], axis=1)             # [B, 4]

    B = card1.shape[0]
    # Batch tile: whole batch when small, else fixed max_tile-row tiles; pad
    # the ragged tail so every block is full (padded rows are sliced off).
    if B <= max_tile:
        tb, bp = B, B
    else:
        tb = max_tile
        bp = pl.cdiv(B, tb) * tb
    if bp != B:
        pad = ((0, bp - B), (0, 0))
        card1 = jnp.pad(card1, pad)
        card2 = jnp.pad(card2, pad)
        ss = jnp.pad(ss, pad)

    # Pack ALL weights/biases into a single VMEM-resident (80, 10) operand,
    # each piece starting on an 8-row boundary (static, aligned kernel slices).
    pack = jnp.zeros((_PACK_ROWS, 10), f32)
    pack = pack.at[_W1A_R:_W1A_R + 13, :].set(w1[:, 0:13].astype(f32).T)
    pack = pack.at[_W1B_R:_W1B_R + 13, :].set(w1[:, 13:26].astype(f32).T)
    pack = pack.at[_W1CD_R:_W1CD_R + 4, :].set(w1[:, 26:30].astype(f32).T)
    pack = pack.at[_B1_R, :].set(b1.astype(f32))
    pack = pack.at[_W2_R:_W2_R + 5, :].set(w2.astype(f32))
    pack = pack.at[_B2_R:_B2_R + 5, 0].set(b2.astype(f32))
    pack = pack.at[_W3_R, 0:5].set(w3[0].astype(f32))
    pack = pack.at[_B3_R, 0].set(b3[0].astype(f32))

    n_blocks = bp // tb

    grid_spec = pltpu.PrefetchScalarGridSpec(
        num_scalar_prefetch=0,
        grid=(n_blocks,),
        in_specs=[
            pl.BlockSpec((tb, 13), lambda i: (i, 0)),      # card1
            pl.BlockSpec((tb, 13), lambda i: (i, 0)),      # card2
            pl.BlockSpec((tb, 4), lambda i: (i, 0)),       # suited|stacksize
            pl.BlockSpec((_PACK_ROWS, 10), lambda i: (0, 0)),  # packed weights
        ],
        out_specs=pl.BlockSpec((1, tb), lambda i: (0, i)),  # lane-dense output
    )

    cost = pl.CostEstimate(
        flops=2 * bp * (30 * 10 + 10 * 5 + 5 * 1),
        transcendentals=bp,                                 # exp per row
        bytes_accessed=bp * (13 * card1.dtype.itemsize
                             + 13 * card2.dtype.itemsize
                             + 4 * ss.dtype.itemsize
                             + 4),
    )

    out = pl.pallas_call(
        _pusher_kernel,
        out_shape=jax.ShapeDtypeStruct((1, bp), f32),
        grid_spec=grid_spec,
        compiler_params=pltpu.CompilerParams(
            dimension_semantics=("parallel",),
            vmem_limit_bytes=_VMEM_LIMIT_BYTES),
        cost_estimate=cost,
    )(card1, card2, ss, pack)

    # (1, Bp) -> [B, 1]; metadata-only glue.
    return out[0, :B].reshape(B, 1)


def pusher_reference(card1, card2, suited, stacksize, params):
    """Pure-JAX reference matching the PyTorch module exactly."""
    w1, b1, w2, b2, w3, b3 = params
    x = jnp.concatenate([card1, card2, suited, stacksize], axis=1)
    h1 = jnp.maximum(x @ w1.T + b1, 0.0)
    h2 = jnp.maximum(h1 @ w2.T + b2, 0.0)
    return jax.nn.sigmoid(h2 @ w3.T + b3)


def init_params(key):
    """nn.Linear-style init: U[-1/sqrt(fan_in), 1/sqrt(fan_in)], PyTorch layout."""
    def linear(k, fan_in, fan_out):
        kw, kb = jax.random.split(k)
        bound = 1.0 / jnp.sqrt(float(fan_in))
        w = jax.random.uniform(kw, (fan_out, fan_in), jnp.float32, -bound, bound)
        b = jax.random.uniform(kb, (fan_out,), jnp.float32, -bound, bound)
        return w, b

    k1, k2, k3 = jax.random.split(key, 3)
    w1, b1 = linear(k1, 30, 10)
    w2, b2 = linear(k2, 10, 5)
    w3, b3 = linear(k3, 5, 1)
    return (w1, b1, w2, b2, w3, b3)


if __name__ == "__main__":
    key = jax.random.PRNGKey(0)
    kp, k1, k2, k3, k4 = jax.random.split(key, 5)

    params = init_params(kp)

    B = 8
    card1 = jax.random.normal(k1, (B, 13), jnp.float32)
    card2 = jax.random.normal(k2, (B, 13), jnp.float32)
    suited = jax.random.normal(k3, (B, 1), jnp.float32)
    stacksize = jax.random.normal(k4, (B, 3), jnp.float32)

    out = jax.jit(pusher_forward)(card1, card2, suited, stacksize, params)
    out = jax.block_until_ready(out)

    ref = pusher_reference(card1, card2, suited, stacksize, params)

    assert out.shape == (B, 1)
    assert bool(jnp.all(jnp.isfinite(out)))
    assert bool(jnp.allclose(out, ref, atol=1e-5, rtol=1e-5)), (out, ref)

    print("KERNEL_OK")
</pallas_src>

<mosaic_0001>
module attributes {stable_mosaic.version = 11 : i64} {
  func.func @_pusher_kernel(%arg0: i32, %arg1: memref<8x13xf32, #tpu.memory_space<vmem>>, %arg2: memref<8x13xf32, #tpu.memory_space<vmem>>, %arg3: memref<8x4xf32, #tpu.memory_space<vmem>>, %arg4: memref<80x10xf32, #tpu.memory_space<vmem>>, %arg5: memref<1x8xf32, #tpu.memory_space<vmem>>) attributes {dimension_semantics = [#tpu.dimension_semantics<parallel>], iteration_bounds = array<i64: 1>, scalar_prefetch = 0 : i64, scratch_operands = 0 : i64, tpu.core_type = #tpu.core_type<tc>, window_params = [{transform_indices = @transform_0, window_bounds = array<i64: 8, 13>}, {transform_indices = @transform_1, window_bounds = array<i64: 8, 13>}, {transform_indices = @transform_2, window_bounds = array<i64: 8, 4>}, {pipeline_mode = #tpu.pipeline_mode<synchronous>, transform_indices = @transform_3, window_bounds = array<i64: 80, 10>}, {transform_indices = @transform_4, window_bounds = array<i64: 1, 8>}]} {
    %c0 = arith.constant 0 : index
    %c0_0 = arith.constant 0 : index
    %0 = vector.load %arg1[%c0, %c0_0] : memref<8x13xf32, #tpu.memory_space<vmem>>, vector<8x13xf32>
    %c0_1 = arith.constant 0 : index
    %c0_2 = arith.constant 0 : index
    %1 = vector.load %arg2[%c0_1, %c0_2] : memref<8x13xf32, #tpu.memory_space<vmem>>, vector<8x13xf32>
    %c0_3 = arith.constant 0 : index
    %c0_4 = arith.constant 0 : index
    %2 = vector.load %arg3[%c0_3, %c0_4] : memref<8x4xf32, #tpu.memory_space<vmem>>, vector<8x4xf32>
    %c0_5 = arith.constant 0 : index
    %c0_6 = arith.constant 0 : index
    %3 = vector.load %arg4[%c0_5, %c0_6] : memref<80x10xf32, #tpu.memory_space<vmem>>, vector<13x10xf32>
    %cst = arith.constant dense<0.000000e+00> : vector<8x10xf32>
    %4 = tpu.matmul %0, %3, %cst {dimension_numbers = #tpu.dot_dimension_numbers<[1], [0], [0], [1], [0, 0, 1, 1], [], []>} : vector<8x13xf32>, vector<13x10xf32>, vector<8x10xf32> -> vector<8x10xf32>
    %c16 = arith.constant 16 : index
    %c0_7 = arith.constant 0 : index
    %5 = vector.load %arg4[%c16, %c0_7] : memref<80x10xf32, #tpu.memory_space<vmem>>, vector<13x10xf32>
    %cst_8 = arith.constant dense<0.000000e+00> : vector<8x10xf32>
    %6 = tpu.matmul %1, %5, %cst_8 {dimension_numbers = #tpu.dot_dimension_numbers<[1], [0], [0], [1], [0, 0, 1, 1], [], []>} : vector<8x13xf32>, vector<13x10xf32>, vector<8x10xf32> -> vector<8x10xf32>
    %7 = arith.addf %4, %6 : vector<8x10xf32>
    %c32 = arith.constant 32 : index
    %c0_9 = arith.constant 0 : index
    %8 = vector.load %arg4[%c32, %c0_9] : memref<80x10xf32, #tpu.memory_space<vmem>>, vector<4x10xf32>
    %cst_10 = arith.constant dense<0.000000e+00> : vector<8x10xf32>
    %9 = tpu.matmul %2, %8, %cst_10 {dimension_numbers = #tpu.dot_dimension_numbers<[1], [0], [0], [1], [0, 0, 1, 1], [], []>} : vector<8x4xf32>, vector<4x10xf32>, vector<8x10xf32> -> vector<8x10xf32>
    %10 = arith.addf %7, %9 : vector<8x10xf32>
    %c40 = arith.constant 40 : index
    %c0_11 = arith.constant 0 : index
    %11 = vector.load %arg4[%c40, %c0_11] : memref<80x10xf32, #tpu.memory_space<vmem>>, vector<1x10xf32>
    %12 = vector.broadcast %11 : vector<1x10xf32> to vector<8x10xf32>
    %13 = arith.addf %10, %12 : vector<8x10xf32>
    %cst_12 = arith.constant 0.000000e+00 : f32
    %14 = vector.broadcast %cst_12 : f32 to vector<8x10xf32>
    %15 = arith.maximumf %13, %14 : vector<8x10xf32>
    %16 = tpu.transpose %15, [1, 0] : vector<8x10xf32> -> vector<10x8xf32>
    %c48 = arith.constant 48 : index
    %c0_13 = arith.constant 0 : index
    %17 = vector.load %arg4[%c48, %c0_13] : memref<80x10xf32, #tpu.memory_space<vmem>>, vector<5x10xf32>
    %cst_14 = arith.constant dense<0.000000e+00> : vector<5x8xf32>
    %18 = tpu.matmul %17, %16, %cst_14 {dimension_numbers = #tpu.dot_dimension_numbers<[1], [0], [0], [1], [0, 0, 1, 1], [], []>} : vector<5x10xf32>, vector<10x8xf32>, vector<5x8xf32> -> vector<5x8xf32>
    %c56 = arith.constant 56 : index
    %c0_15 = arith.constant 0 : index
    %19 = vector.load %arg4[%c56, %c0_15] : memref<80x10xf32, #tpu.memory_space<vmem>>, vector<5x1xf32>
    %20 = vector.broadcast %19 : vector<5x1xf32> to vector<5x8xf32>
    %21 = arith.addf %18, %20 : vector<5x8xf32>
    %cst_16 = arith.constant 0.000000e+00 : f32
    %22 = vector.broadcast %cst_16 : f32 to vector<5x8xf32>
    %23 = arith.maximumf %21, %22 : vector<5x8xf32>
    %c64 = arith.constant 64 : index
    %c0_17 = arith.constant 0 : index
    %24 = vector.load %arg4[%c64, %c0_17] : memref<80x10xf32, #tpu.memory_space<vmem>>, vector<1x5xf32>
    %cst_18 = arith.constant dense<0.000000e+00> : vector<1x8xf32>
    %25 = tpu.matmul %24, %23, %cst_18 {dimension_numbers = #tpu.dot_dimension_numbers<[1], [0], [0], [1], [0, 0, 1, 1], [], []>} : vector<1x5xf32>, vector<5x8xf32>, vector<1x8xf32> -> vector<1x8xf32>
    %c72 = arith.constant 72 : index
    %c0_19 = arith.constant 0 : index
    %26 = vector.load %arg4[%c72, %c0_19] : memref<80x10xf32, #tpu.memory_space<vmem>>, vector<1x1xf32>
    %27 = vector.broadcast %26 : vector<1x1xf32> to vector<1x8xf32>
    %28 = arith.addf %25, %27 : vector<1x8xf32>
    %cst_20 = arith.constant -3.000000e+01 : f32
    %cst_21 = arith.constant 3.000000e+01 : f32
    %29 = vector.broadcast %cst_20 : f32 to vector<1x8xf32>
    %30 = arith.maximumf %29, %28 : vector<1x8xf32>
    %31 = vector.broadcast %cst_21 : f32 to vector<1x8xf32>
    %32 = arith.minimumf %31, %30 : vector<1x8xf32>
    %cst_22 = arith.constant 0.000000e+00 : f32
    %33 = vector.broadcast %cst_22 : f32 to vector<1x8xf32>
    %34 = arith.subf %33, %32 : vector<1x8xf32>
    %35 = math.exp %34 : vector<1x8xf32>
    %cst_23 = arith.constant 1.000000e+00 : f32
    %36 = vector.broadcast %cst_23 : f32 to vector<1x8xf32>
    %37 = arith.addf %36, %35 : vector<1x8xf32>
    %38 = tpu.reciprocal %37 : vector<1x8xf32> -> vector<1x8xf32>
    %c0_24 = arith.constant 0 : index
    %c0_25 = arith.constant 0 : index
    %39 = vector.load %arg5[%c0_24, %c0_25] : memref<1x8xf32, #tpu.memory_space<vmem>>, vector<1x8xf32>
    tpu.vector_store %arg5[%c0_24, %c0_25], %38 {strides = array<i32>} : memref<1x8xf32, #tpu.memory_space<vmem>>, vector<1x8xf32>,
    return
  }
  func.func @transform_0(%arg0: i32) -> (i32, i32) {
    %c0_i32 = arith.constant 0 : i32
    %c0_i32_0 = arith.constant 0 : i32
    return %arg0, %c0_i32 : i32, i32
  }
  func.func @transform_1(%arg0: i32) -> (i32, i32) {
    %c0_i32 = arith.constant 0 : i32
    %c0_i32_0 = arith.constant 0 : i32
    return %arg0, %c0_i32 : i32, i32
  }
  func.func @transform_2(%arg0: i32) -> (i32, i32) {
    %c0_i32 = arith.constant 0 : i32
    %c0_i32_0 = arith.constant 0 : i32
    return %arg0, %c0_i32 : i32, i32
  }
  func.func @transform_3(%arg0: i32) -> (i32, i32) {
    %c0_i32 = arith.constant 0 : i32
    %c0_i32_0 = arith.constant 0 : i32
    %c0_i32_1 = arith.constant 0 : i32
    return %c0_i32, %c0_i32_0 : i32, i32
  }
  func.func @transform_4(%arg0: i32) -> (i32, i32) {
    %c0_i32 = arith.constant 0 : i32
    %c0_i32_0 = arith.constant 0 : i32
    return %c0_i32, %arg0 : i32, i32
  }
}

</mosaic_0001>

<bundles_post_ra>
// kernel: pusher_forward.1
= control target key start
LH: loop header
LB: loop body
LE: loop exit
PB: predicated region body
PF: predicated region fallthrough
CT: control target
= control target key end

     0   :  { %vm29_vm0 = vcmask 1044480   ;;  %v554_v2 = vmov 0.0|0.0   ;;  %vm555_vm1 = vmmov 1   ;;  %vm556_vm3 = vmmov 0   ;;  %s643_s0 = inlined_call_operand.vmem [shape: f32[8,13], index: 0, kind: input, shape index: {}]   ;;  %s644_s1 = inlined_call_operand.vmem [shape: f32[8,13], index: 1, kind: input, shape index: {}]   ;;  %s645_s2 = inlined_call_operand.vmem [shape: f32[8,4], index: 2, kind: input, shape index: {}]   ;;  %s646_s3 = inlined_call_operand.vmem [shape: f32[80,10], index: 3, kind: input, shape index: {}]   ;;  %s647_s4 = inlined_call_operand.hbm [shape: f32[1,8], index: 4, kind: output, shape index: {}]  }
   0x1   :  { %v23_v0 = vld [vmem:[%s646_s3 + $0x10] sm:$0xff]  ;;  %v24_v1 = vld [vmem:[%s646_s3 + $0x18] sm:$0x1f]  ;;  %511 = vmatprep.subr.bf16.mxu0 %v554_v2  ;;  %515 = vmatprep.subr.bf16.mxu1 %v554_v2  ;;  %vm513_vm2 = vmpackc.low %vm29_vm0, %vm555_vm1  ;;  %v557_v7 = vmov 0.0   ;;  %vm25_vm4 = vcmask 105472  }
   0x2   :  { %v512_v3 = vpack.c.bf16 %v24_v1, %v23_v0  ;;  %v21_v4 = vld [vmem:[%s646_s3] sm:$0xff]  ;;  %v22_v5 = vld [vmem:[%s646_s3 + $0x8] sm:$0x1f]  ;;  %486 = vmatprep.mubr.msk.f32.mxu0 %vm556_vm3, %v557_v7  ;;  %493 = vmatprep.mubr.msk.f32.mxu1 %vm556_vm3, %v557_v7 }
   0x3   :  { %v516_v6 = vpack.c.bf16 %v22_v5, %v21_v4  ;;  %v19_v8 = vld [vmem:[%s644_s1] sm:$0xff] }
   0x4   :  { %514 = vmatpush3.bf16.msk.msra.mxu0 %vm513_vm2, %v512_v3 }
   0x5   :  { %9 = vsyncpa [#allocation3], 0  ;;  %518 = vmatpush3.bf16.msk.msra.mxu1 %vm513_vm2, %v516_v6  ;;  %v18_v9 = vld [vmem:[%s643_s0] sm:$0xff]  ;;  %496 = vmatprep.subr.mxu0 %v557_v7  ;;  %vm184_vm5 = vcmask 1043456   ;;  %vm180_vm6 = vcmask 31744   ;;  %v558_v13 = vmov 0  }
   0x6   :  { %v179_v10 = vld [vmem:[%s646_s3 + $0x20] sm:$0xf]  ;;  %501 = vmatprep.subr.mxu1 %v557_v7  ;;  %v267_v12 = vld [vmem:[%s646_s3 + $0x38] sm:$0x1f]  ;;  %525 = vset.pattern.permute.xlu0 %v558_v13  ;;  %v352_v14 = vld [vmem:[%s646_s3 + $0x48] sm:$0x1] }
   0x7   :  { %487 = vmatmul.mubr.msk.f32.vlgmr.msra.gmra.mrb[0].mxu0 %vm25_vm4, %v19_v8  ;;  %v20_v11 = vld [vmem:[%s645_s2] sm:$0xff]  ;;  %270 = vperm.xlu0 %525, %v267_v12   ;;  %v464_v21 = vld [vmem:[%s646_s3 + $0x28] ss:$0 sm:$0xff]  ;;  %vm273_vm7 = vcmask 80896   ;;  %v266_v26 = vld [vmem:[%s646_s3 + $0x30] sm:$0x1f] }
   0x8   :  { %494 = vmatmul.mubr.msk.f32.vlgmr.msra.gmra.mrb[0].mxu1 %vm25_vm4, %v18_v9  ;;  %497 = vmatpush3.msk.msra.mxu0 %vm184_vm5, %v179_v10  ;;  %v351_v32 = vld [vmem:[%s646_s3 + $0x40] sm:$0x1]  ;;  %vm358_vm8 = vcmask 39936   ;;  %s559_s12 = smov [#allocation2]   ;;  %vm442_vm9 = vcmask 57344  }
   0x9   :  { %498 = vmatprep.mubr.msk.f32.mxu0 %vm556_vm3, %v557_v7  ;;  %503 = vmatprep.mubr.msk.f32.mxu1 %vm556_vm3, %v557_v7  ;;  %s450_s13 = sshll.u32 %s559_s12, 4  ;;  %s451_s13 = int_to_ptr.vmem [resolvable:$true] %s450_s13 }
   0xa   :  { %506 = vmatprep.subr.mxu0 %v557_v7  ;;  %s530_s3 = scalar_lea.vmem %s451_s13, 16  ;;  %s534_s14 = scalar_lea.vmem %s451_s13, 32 }
   0xb   :  { %499 = vmatmul.mubr.msk.f32.vlgmr.msra.gmra.mrb[2].mxu0 %vm180_vm6, %v20_v11  ;;  %355 = vperm.xlu0 %525, %v352_v14   ;;  %p531_p0 = scmp.ne.s32.totalorder %s451_s13, %s530_s3  ;;  %p535_p1 = scmp.lt.s32.totalorder %s451_s13, %s451_s13 }
   0xc   :  { %508 = vmatprep.mubr.msk.f32.mxu0 %vm556_vm3, %v557_v7  ;;  %p536_p2 = scmp.lt.s32.totalorder %s534_s14, %s530_s3 }
   0xe   :  { %p537_p3 = por %p536_p2, %p535_p1 }
  0x10   :  { %p538_p4 = pnand %p537_p3, %p531_p0 }
  0x86   :  { %v271_v27 = vpop.permute.xlu0 %270 }
  0x8a   :  { %v356_v33 = vpop.permute.xlu0 %355 }
  0xda   :  { %v99_v15 = vpop.f32.mrb[0].mxu0 }
  0xdb   :  { %v175_v16 = vpop.f32.mrb[0].mxu1  ;;  %v488_v17 = vpop.f32.mrb[1].mxu0 }
  0xdc   :  { %v176_v18 = vadd.f32 %v175_v16, %v99_v15  ;;  %v495_v19 = vpop.f32.mrb[1].mxu1 }
  0xde   :  { %v254_v20 = vpop.f32.mrb[2].mxu0 }
  0xdf   :  { %v258_v22 = vadd.f32 %v254_v20, %v176_v18  ;;  %v500_v23 = vpop.f32.mrb[3].mxu0 }
  0xe1   :  { %v264_v24 = vadd.f32 %v464_v21, %v258_v22 }
  0xe3   :  { %v265_v25 = vmax.f32 %v264_v24, 0.0 }
  0xe5   :  { %502 = vmatpush3.xpose.msk.msra.mxu1 %vm273_vm7, %v265_v25 }
  0xe8   :  { %504 = vmatmul.mubr.msk.f32.vlgmr.msra.gmra.mrb[2].mxu1 %vm273_vm7, %v266_v26 }
 0x1bb   :  { %v346_v28 = vpop.f32.mrb[2].mxu1 }
 0x1bc   :  { %v347_v29 = vadd.f32 %v346_v28, %v271_v27  ;;  %v505_v30 = vpop.f32.mrb[3].mxu1 }
 0x1be   :  { %v350_v31 = vmax.f32 %v347_v29, 0.0 }
 0x1c0   :  { %507 = vmatpush3.msk.msra.mxu0 %vm29_vm0, %v350_v31 }
 0x1c1   :  { %509 = vmatmul.mubr.msk.f32.vlgmr.msra.gmra.mrb[4].mxu0 %vm358_vm8, %v351_v32 }
 0x294   :  { %v431_v34 = vpop.f32.mrb[4].mxu0 }
 0x295   :  { %v432_v35 = vadd.f32 %v431_v34, %v356_v33  ;;  %v510_v36 = vpop.f32.mrb[5].mxu0 }
 0x297   :  { %v469_v37 = vclamps-f32 %v432_v35, 30.0 }
 0x299   :  { %v437_v38 = vsub.f32 0.0, %v469_v37 }
 0x29b   :  { %v438_v39 = vmul.f32 1.442695, %v437_v38 }
 0x29d   :  { %526 = vpow2.f32 %v438_v39 }
 0x2a7   :  { %v527_v40 = vpop.eup %526 }
 0x2a8   :  { %v440_v41 = vadd.f32 1.0, %v527_v40 }
 0x2aa   :  { %528 = vrcp.f32 %v440_v41 }
 0x2b4   :  { %v529_v42 = vpop.eup %528 }
 0x2b5   :  { %443 = vst.msk [vmem:[#allocation2] sm:$0x1] %vm442_vm9, %v529_v42 }
 0x2b6   :  { %541 = shalt.err (!%p538_p4)
}
 0x2b7   :  { %s542_s17 = scalar_lea.hbm %s647_s4, 16 }
 0x2b8   :  { %p543_p5 = scmp.ne.s32.totalorder %s647_s4, %s542_s17  ;;  %p546_p6 = scmp.lt.u32.totalorder %s542_s17, %s647_s4 }
 0x2ba   :  { %p548_p7 = pnand %p546_p6, %p543_p5 }
 0x2bc   :  { %551 = shalt.err (!%p548_p7)
}
 0x2bd   :  { %453 = dma.vmem_to_hbm [thread:$0]  %s451_s13, 16, %s647_s4, [#allocation3]  }
 0x2be   :  { %552 = dma.done.wait [#allocation3], 16  }
 0x2bf   :  { %553 = vsyncadd [#allocation3], 4294967280 }
 0x2c0   :  { %457 = vsyncpa [#allocation3], 1 }

</bundles_post_ra>
